<compile_context>
chip_gen: v6e
topology: v6e:2x2x1
jax: 0.10.0
libtpu: 0.0.40
codegen_flags: <defaults>
</compile_context>

<pallas_src>
import functools
import math

import jax
import jax.numpy as jnp
from jax.experimental import pallas as pl
from jax.experimental.pallas import tpu as pltpu


# ---------------------------------------------------------------------------
# Generation-aware knobs
# ---------------------------------------------------------------------------
def _vmem_limit_bytes():
    """~75% of physical VMEM: ~96 MiB on v5e/v6e (128 MiB), ~48 MiB on v7x (64 MiB)."""
    try:
        cap = pltpu.get_tpu_info().vmem_capacity_bytes
    except Exception:
        cap = 64 * 1024 * 1024           # conservative fallback (v7x-sized)
    return int(min(cap * 3 // 4, 112 * 1024 * 1024))


def _default_tq():
    """v5e: M=128 already saturates its 4x128^2 MXU and the f32 softmax/mask
    elementwise work is relatively heavier there -> use tq=128; else 256."""
    try:
        kind = jax.devices()[0].device_kind.lower()
        if "v5 lite" in kind or "v5e" in kind or "v5lite" in kind:
            return 128
    except Exception:
        pass
    return 256


# ---------------------------------------------------------------------------
# Kernel 1: fused projection (+LeakyReLU) + head split + RoPE, head-major out
# ---------------------------------------------------------------------------
def _proj_rope_kernel(x_ref, w_ref, b_ref, *rest, H, Hd, apply_act, neg_slope,
                      apply_rope):
    if apply_rope:
        cos_ref, sin_ref, o_ref = rest
    else:
        (o_ref,) = rest

    x = x_ref[0].astype(jnp.bfloat16)                       # (tl, Din) bf16 MXU operand
    y = jnp.dot(x, w_ref[...], preferred_element_type=jnp.float32)   # (tl, Dout) f32
    y = y + b_ref[...]
    if apply_act:                                           # LeakyReLU(neg_slope)
        y = jnp.where(y >= 0.0, y, neg_slope * y)

    half = Hd // 2
    use_roll = (Hd % 128 == 0)       # XLU lane rotate only when lane-dim aligned
    for h in range(H):               # static unroll over heads
        yh = y[:, h * Hd:(h + 1) * Hd]                      # (tl, Hd)
        if apply_rope:
            if use_roll:
                rot = pltpu.roll(yh, half, 1)               # concat([x2, x1]) via XLU
            else:
                rot = jnp.concatenate([yh[:, half:], yh[:, :half]], axis=1)
            # rotate-half sign folded into the signed sin table; the q-side
            # tables also carry the 1/sqrt(Hd) scale -> score scaling is free.
            yh = yh * cos_ref[...] + rot * sin_ref[...]
        o_ref[0, h, :, :] = yh.astype(o_ref.dtype)          # head-major bf16 write


def pallas_project(x, w_t, bias, cos=None, sin=None, *, H, Hd, apply_act,
                   apply_rope, neg_slope=0.2, tl=256, out_dtype=jnp.bfloat16):
    """x: (B, L, Din) f32; w_t: (Din, H*Hd) bf16 (pre-transposed / pre-cast once);
    bias: (H*Hd,); cos/sin: (L, Hd) signed (and, for Q, pre-scaled) RoPE tables.
    Returns head-major (B, H, L, Hd) in `out_dtype` (bf16 halves attention DMA)."""
    B, L, Din = x.shape
    Dout = w_t.shape[1]
    assert Dout == H * Hd
    tl = min(tl, L)
    nl = pl.cdiv(L, tl)
    b2 = jnp.asarray(bias, jnp.float32).reshape(1, Dout)

    in_specs = [
        pl.BlockSpec((1, tl, Din), lambda b, i: (b, i, 0)),
        pl.BlockSpec((Din, Dout), lambda b, i: (0, 0)),      # weight resident
        pl.BlockSpec((1, Dout), lambda b, i: (0, 0)),        # bias resident
    ]
    args = [x, w_t, b2]
    if apply_rope:
        in_specs += [pl.BlockSpec((tl, Hd), lambda b, i: (i, 0)),
                     pl.BlockSpec((tl, Hd), lambda b, i: (i, 0))]
        args += [cos, sin]

    kern = functools.partial(_proj_rope_kernel, H=H, Hd=Hd, apply_act=apply_act,
                             neg_slope=neg_slope, apply_rope=apply_rope)
    return pl.pallas_call(
        kern,
        out_shape=jax.ShapeDtypeStruct((B, H, L, Hd), out_dtype),
        grid=(B, nl),
        in_specs=in_specs,
        out_specs=pl.BlockSpec((1, H, tl, Hd), lambda b, i: (b, 0, i, 0)),
        compiler_params=pltpu.CompilerParams(
            dimension_semantics=("parallel", "parallel"),
            vmem_limit_bytes=_vmem_limit_bytes()),
    )(*args)


# ---------------------------------------------------------------------------
# Kernel 2: flash-style RoPE-MHA, grid = (B, Lq-tiles, Lk-chunks)
# ---------------------------------------------------------------------------
def _attn_kernel(q_ref, k_ref, v_ref, qm_ref, km_ref, o_ref,
                 m_sc, l_sc, acc_sc, *, causal, masked_bias, lk_total, H):
    kk = pl.program_id(2)

    @pl.when(kk == 0)
    def _():
        m_sc[...] = jnp.full(m_sc.shape, -jnp.inf, m_sc.dtype)
        l_sc[...] = jnp.zeros(l_sc.shape, l_sc.dtype)
        acc_sc[...] = jnp.zeros(acc_sc.shape, acc_sc.dtype)

    q = q_ref[0]                     # (H, tq, Hd) bf16, RoPE + 1/sqrt(Hd) pre-applied
    k = k_ref[0]                     # (H, tk, Hd) bf16, RoPE pre-applied
    v = v_ref[0]                     # (H, tk, Hd) bf16
    tq, tk = q.shape[1], k.shape[1]

    # content scores on the MXU; intermediates are (H, tq, tk) — independent of Lk
    s = jnp.einsum("hqd,hkd->hqk", q, k, preferred_element_type=jnp.float32)

    # padding (+ causal) mask rebuilt from the (tq,1)/(1,tk) vectors in-kernel
    allowed = (qm_ref[0] * km_ref[0]) > 0.0                  # (tq, tk)
    col = jax.lax.broadcasted_iota(jnp.int32, (tq, tk), 1) + kk * tk
    if lk_total % tk != 0:           # guard the padded tail Lk chunk
        allowed = jnp.logical_and(allowed, col < lk_total)
        colv = jax.lax.broadcasted_iota(jnp.int32, (1, tk, 1), 1) + kk * tk
        v = jnp.where(colv < lk_total, v, jnp.zeros_like(v))
    if causal is not None:
        row = (jax.lax.broadcasted_iota(jnp.int32, (tq, tk), 0)
               + pl.program_id(1) * tq)
        allowed = jnp.logical_and(allowed, (col - row) <= causal)

    w = jnp.where(allowed[None], s, masked_bias)             # (H, tq, tk) f32

    # online softmax (flash): running max / denom / accumulator in VMEM scratch
    m_prev = m_sc[...]
    m_new = jnp.maximum(m_prev, jnp.max(w, axis=-1, keepdims=True))
    alpha = jnp.exp(m_prev - m_new)
    e = jnp.exp(w - m_new)
    # denominator keeps the (underflowed) masked terms -> matches softmax();
    # the boolean mask zeroes the numerator only ("softmax(w) * mask").
    l_sc[...] = alpha * l_sc[...] + jnp.sum(e, axis=-1, keepdims=True)
    p = (e * allowed[None].astype(jnp.float32)).astype(jnp.bfloat16)
    # TODO(synk): dropout(p) treated as inference-mode identity.
    acc_sc[...] = alpha * acc_sc[...] + jnp.einsum(
        "hqk,hkd->hqd", p, v, preferred_element_type=jnp.float32)
    m_sc[...] = m_new

    @pl.when(kk == pl.num_programs(2) - 1)
    def _():
        inv = pl.reciprocal(l_sc[...], approx=True)          # (H, tq, 1) on the EUP
        out = acc_sc[...] * inv                              # (H, tq, Hd) f32
        # lane-dense merged-head write: one (tq, H*Hd) block; kernel output IS
        # the module output (no post-kernel transpose/reshape HBM pass).
        merged = jnp.concatenate([out[h] for h in range(H)], axis=-1)
        o_ref[0] = merged.astype(o_ref.dtype)


def pallas_rope_mha_attention(q, k, v, q_mask, k_mask, *, causal, masked_bias,
                              tq=None, tk=512):
    """q/k/v: (B, H, L, Hd) bf16 (RoPE + scaling already applied to q/k);
    masks: (B, L) floats. Returns merged-head (B, Lq, H*Hd) f32."""
    B, H, Lq, Hd = q.shape
    Lk = k.shape[2]
    tq = _default_tq() if tq is None else tq
    tq = min(tq, Lq)
    tk = min(tk, Lk)
    nq, nk = pl.cdiv(Lq, tq), pl.cdiv(Lk, tk)

    qm = q_mask.astype(jnp.float32).reshape(B, Lq, 1)
    km = k_mask.astype(jnp.float32).reshape(B, 1, Lk)

    kern = functools.partial(_attn_kernel, causal=causal, masked_bias=masked_bias,
                             lk_total=Lk, H=H)
    return pl.pallas_call(
        kern,
        out_shape=jax.ShapeDtypeStruct((B, Lq, H * Hd), jnp.float32),
        grid=(B, nq, nk),
        in_specs=[
            pl.BlockSpec((1, H, tq, Hd), lambda b, i, kk: (b, 0, i, 0)),   # q tile
            pl.BlockSpec((1, H, tk, Hd), lambda b, i, kk: (b, 0, kk, 0)),  # k chunk
            pl.BlockSpec((1, H, tk, Hd), lambda b, i, kk: (b, 0, kk, 0)),  # v chunk
            pl.BlockSpec((1, tq, 1), lambda b, i, kk: (b, i, 0)),          # q_mask rows
            pl.BlockSpec((1, 1, tk), lambda b, i, kk: (b, 0, kk)),         # k_mask cols
        ],
        out_specs=pl.BlockSpec((1, tq, H * Hd), lambda b, i, kk: (b, i, 0)),
        scratch_shapes=[pltpu.VMEM((H, tq, 1), jnp.float32),    # running max
                        pltpu.VMEM((H, tq, 1), jnp.float32),    # running denom
                        pltpu.VMEM((H, tq, Hd), jnp.float32)],  # output accumulator
        compiler_params=pltpu.CompilerParams(
            dimension_semantics=("parallel", "parallel", "arbitrary"),
            vmem_limit_bytes=_vmem_limit_bytes()),
    )(q, k, v, qm, km)


# ---------------------------------------------------------------------------
# JAX glue: parameters, RoPE tables, forward
# ---------------------------------------------------------------------------
def xavier_uniform(key_, shape):
    fan_out, fan_in = shape
    bound = math.sqrt(6.0 / (fan_in + fan_out))
    return jax.random.uniform(key_, shape, jnp.float32, -bound, bound)


def init_rope_mha_params(key_, embed_dim, num_heads):
    assert embed_dim % num_heads == 0
    ks = jax.random.split(key_, 3)
    p = dict(H=num_heads, Hd=embed_dim // num_heads, d=embed_dim)
    for name, sub in zip(("WQ", "WK", "WV"), ks):
        w = xavier_uniform(sub, (embed_dim, embed_dim))       # torch (Dout, Din)
        p[f"{name}_w"] = w                                    # f32, reference use
        p[f"{name}_wt"] = w.T.astype(jnp.bfloat16)            # (Din, Dout) bf16, kernel-ready
        p[f"{name}_b"] = jnp.zeros((embed_dim,), jnp.float32)
    return p


def _rope_cos_sin(length, head_dim, base=10000.0):
    half = head_dim // 2
    inv_freq = base ** (-jnp.arange(half, dtype=jnp.float32) * (2.0 / head_dim))
    ang = jnp.arange(length, dtype=jnp.float32)[:, None] * inv_freq[None, :]
    return jnp.cos(ang), jnp.sin(ang)                         # each (L, Hd//2)


def rope_kernel_tables(length, head_dim, base=10000.0, scale=1.0):
    """cos/sin tables with the rotate-half SIGN folded into the sin table
    ([-s, s]) and an optional global scale (used to fold 1/sqrt(Hd) into the
    q-side tables so the score scaling is free)."""
    cos, sin = _rope_cos_sin(length, head_dim, base)
    cos_t = jnp.concatenate([cos, cos], axis=-1) * scale
    sin_t = jnp.concatenate([-sin, sin], axis=-1) * scale
    return cos_t, sin_t


def rope_mha_forward(params, query, key, value, q_mask, k_mask, causal=None,
                     intercalate_act=True, rope_base=10000.0):
    B, Lq, D = query.shape
    Lk = key.shape[1]
    H, Hd = params["H"], params["Hd"]
    inv_scale = 1.0 / math.sqrt(Hd)

    cos_q, sin_q = rope_kernel_tables(Lq, Hd, rope_base, scale=inv_scale)
    cos_k, sin_k = rope_kernel_tables(Lk, Hd, rope_base, scale=1.0)

    # fused projection (+LeakyReLU) + head split + RoPE -> head-major bf16 q/k/v
    q = pallas_project(query, params["WQ_wt"], params["WQ_b"], cos_q, sin_q,
                       H=H, Hd=Hd, apply_act=intercalate_act, apply_rope=True)
    k = pallas_project(key, params["WK_wt"], params["WK_b"], cos_k, sin_k,
                       H=H, Hd=Hd, apply_act=intercalate_act, apply_rope=True)
    v = pallas_project(value, params["WV_wt"], params["WV_b"],
                       H=H, Hd=Hd, apply_act=intercalate_act, apply_rope=False)

    # flash-style attention; returns merged heads (B, Lq, D) directly
    return pallas_rope_mha_attention(q, k, v, q_mask, k_mask, causal=causal,
                                     masked_bias=-1e10 * inv_scale)


# ---------------------------------------------------------------------------
# Pure-JAX reference (mirrors the PyTorch ROPEMHA forward) for a sanity check
# ---------------------------------------------------------------------------
def rope_mha_reference(params, query, key, value, q_mask, k_mask, causal=None,
                       intercalate_act=True, rope_base=10000.0):
    B, Lq, D = query.shape
    Lk = key.shape[1]
    H, Hd = params["H"], params["Hd"]
    scale = math.sqrt(Hd)

    def lin(x, w, b, act):
        y = x @ w.T + b
        return jnp.where(y >= 0.0, y, 0.2 * y) if act else y

    q = lin(query, params["WQ_w"], params["WQ_b"], intercalate_act)
    k = lin(key, params["WK_w"], params["WK_b"], intercalate_act)
    v = lin(value, params["WV_w"], params["WV_b"], intercalate_act)

    q4 = q.reshape(B, Lq, H, Hd).transpose(0, 2, 1, 3)
    k4 = k.reshape(B, Lk, H, Hd).transpose(0, 2, 1, 3)
    v4 = v.reshape(B, Lk, H, Hd).transpose(0, 2, 1, 3)

    def rope(x, length):
        cos, sin = _rope_cos_sin(length, Hd, rope_base)
        cos = jnp.concatenate([cos, cos], axis=-1)
        sin = jnp.concatenate([sin, sin], axis=-1)
        half = Hd // 2
        x1, x2 = x[..., :half], x[..., half:]
        rot = jnp.concatenate([-x2, x1], axis=-1)
        return x * cos[None, None] + rot * sin[None, None]

    q4, k4 = rope(q4, Lq), rope(k4, Lk)

    mask = (q_mask[:, :, None] * k_mask[:, None, :]) > 0.0           # (B, Lq, Lk)
    if causal is not None:
        tri = (jnp.arange(Lk)[None, :] - jnp.arange(Lq)[:, None]) <= causal
        mask = mask & tri[None]
    maskf = mask.astype(jnp.float32)[:, None]                        # (B,1,Lq,Lk)

    scores = jnp.einsum("bhqd,bhkd->bhqk", q4, k4)
    weights = (jnp.where(maskf > 0.0, 0.0, -1e10) + scores) / scale
    p = jax.nn.softmax(weights, axis=-1) * maskf
    out = jnp.einsum("bhqk,bhkd->bhqd", p, v4)
    return out.transpose(0, 2, 1, 3).reshape(B, Lq, D)


# ---------------------------------------------------------------------------
if __name__ == "__main__":
    B, L, D, H = 2, 8, 32, 4

    root = jax.random.PRNGKey(0)
    kp, kq, kk_, kv = jax.random.split(root, 4)
    params = init_rope_mha_params(kp, embed_dim=D, num_heads=H)

    query = jax.random.normal(kq, (B, L, D), jnp.float32)
    key = jax.random.normal(kk_, (B, L, D), jnp.float32)
    value = jax.random.normal(kv, (B, L, D), jnp.float32)

    # padding masks: batch 1 has trailing query/key positions masked out
    q_mask = jnp.ones((B, L), jnp.float32).at[1, -1].set(0.0)
    k_mask = jnp.ones((B, L), jnp.float32).at[1, -2:].set(0.0)

    for causal in (None, 2):
        out = rope_mha_forward(params, query, key, value, q_mask, k_mask,
                               causal=causal, intercalate_act=True)
        out = jax.block_until_ready(out)
        ref = rope_mha_reference(params, query, key, value, q_mask, k_mask,
                                 causal=causal, intercalate_act=True)
        assert out.shape == (B, L, D)
        assert bool(jnp.all(jnp.isfinite(out)))
        max_err = float(jnp.max(jnp.abs(out - ref)))
        assert bool(jnp.allclose(out, ref, rtol=5e-2, atol=5e-2)), max_err

    print("KERNEL_OK")
</pallas_src>

<mosaic_0001>
module attributes {stable_mosaic.version = 11 : i64} {
  func.func @_proj_rope_kernel(%arg0: i32, %arg1: i32, %arg2: memref<1x8x32xf32, #tpu.memory_space<vmem>>, %arg3: memref<32x32xbf16, #tpu.memory_space<vmem>>, %arg4: memref<1x32xf32, #tpu.memory_space<vmem>>, %arg5: memref<8x8xf32, #tpu.memory_space<vmem>>, %arg6: memref<8x8xf32, #tpu.memory_space<vmem>>, %arg7: memref<1x4x8x8xbf16, #tpu.memory_space<vmem>>) attributes {dimension_semantics = [#tpu.dimension_semantics<parallel>, #tpu.dimension_semantics<parallel>], iteration_bounds = array<i64: 2, 1>, scalar_prefetch = 0 : i64, scratch_operands = 0 : i64, tpu.core_type = #tpu.core_type<tc>, window_params = [{transform_indices = @transform_0, window_bounds = array<i64: 1, 8, 32>}, {pipeline_mode = #tpu.pipeline_mode<synchronous>, transform_indices = @transform_1, window_bounds = array<i64: 32, 32>}, {pipeline_mode = #tpu.pipeline_mode<synchronous>, transform_indices = @transform_2, window_bounds = array<i64: 1, 32>}, {transform_indices = @transform_3, window_bounds = array<i64: 8, 8>}, {transform_indices = @transform_4, window_bounds = array<i64: 8, 8>}, {transform_indices = @transform_5, window_bounds = array<i64: 1, 4, 8, 8>}]} {
    %c0 = arith.constant 0 : index
    %c0_0 = arith.constant 0 : index
    %c0_1 = arith.constant 0 : index
    %0 = vector.load %arg2[%c0, %c0_0, %c0_1] : memref<1x8x32xf32, #tpu.memory_space<vmem>>, vector<1x8x32xf32>
    %1 = vector.shape_cast %0 : vector<1x8x32xf32> to vector<8x32xf32>
    %2 = arith.truncf %1 : vector<8x32xf32> to vector<8x32xbf16>
    %c0_2 = arith.constant 0 : index
    %c0_3 = arith.constant 0 : index
    %3 = vector.load %arg3[%c0_2, %c0_3] : memref<32x32xbf16, #tpu.memory_space<vmem>>, vector<32x32xbf16>
    %cst = arith.constant dense<0.000000e+00> : vector<8x32xf32>
    %4 = tpu.matmul %2, %3, %cst {dimension_numbers = #tpu.dot_dimension_numbers<[1], [0], [0], [1], [0, 0, 1, 1], [], []>} : vector<8x32xbf16>, vector<32x32xbf16>, vector<8x32xf32> -> vector<8x32xf32>
    %c0_4 = arith.constant 0 : index
    %c0_5 = arith.constant 0 : index
    %5 = vector.load %arg4[%c0_4, %c0_5] : memref<1x32xf32, #tpu.memory_space<vmem>>, vector<1x32xf32>
    %6 = vector.broadcast %5 : vector<1x32xf32> to vector<8x32xf32>
    %7 = arith.addf %4, %6 : vector<8x32xf32>
    %cst_6 = arith.constant 0.000000e+00 : f32
    %8 = vector.broadcast %cst_6 : f32 to vector<8x32xf32>
    %9 = arith.cmpf oge, %7, %8 : vector<8x32xf32>
    %cst_7 = arith.constant 2.000000e-01 : f32
    %10 = vector.broadcast %cst_7 : f32 to vector<8x32xf32>
    %11 = arith.mulf %10, %7 : vector<8x32xf32>
    %12 = arith.select %9, %7, %11 : vector<8x32xi1>, vector<8x32xf32>
    %13 = vector.extract_strided_slice %12 {offsets = [0, 0], sizes = [8, 8], strides = [1, 1]} : vector<8x32xf32> to vector<8x8xf32>
    %14 = vector.extract_strided_slice %13 {offsets = [0, 4], sizes = [8, 4], strides = [1, 1]} : vector<8x8xf32> to vector<8x4xf32>
    %15 = vector.extract_strided_slice %13 {offsets = [0, 0], sizes = [8, 4], strides = [1, 1]} : vector<8x8xf32> to vector<8x4xf32>
    %16 = tpu.concatenate %14, %15 in 1 : vector<8x4xf32>, vector<8x4xf32> -> vector<8x8xf32>
    %c0_8 = arith.constant 0 : index
    %c0_9 = arith.constant 0 : index
    %17 = vector.load %arg5[%c0_8, %c0_9] : memref<8x8xf32, #tpu.memory_space<vmem>>, vector<8x8xf32>
    %18 = arith.mulf %13, %17 : vector<8x8xf32>
    %c0_10 = arith.constant 0 : index
    %c0_11 = arith.constant 0 : index
    %19 = vector.load %arg6[%c0_10, %c0_11] : memref<8x8xf32, #tpu.memory_space<vmem>>, vector<8x8xf32>
    %20 = arith.mulf %16, %19 : vector<8x8xf32>
    %21 = arith.addf %18, %20 : vector<8x8xf32>
    %22 = arith.truncf %21 : vector<8x8xf32> to vector<8x8xbf16>
    %c0_12 = arith.constant 0 : index
    %c0_13 = arith.constant 0 : index
    %c0_14 = arith.constant 0 : index
    %c0_15 = arith.constant 0 : index
    %23 = vector.load %arg7[%c0_12, %c0_13, %c0_14, %c0_15] : memref<1x4x8x8xbf16, #tpu.memory_space<vmem>>, vector<1x1x8x8xbf16>
    %24 = vector.shape_cast %23 : vector<1x1x8x8xbf16> to vector<8x8xbf16>
    %25 = vector.shape_cast %22 : vector<8x8xbf16> to vector<1x1x8x8xbf16>
    tpu.vector_store %arg7[%c0_12, %c0_13, %c0_14, %c0_15], %25 {strides = array<i32>} : memref<1x4x8x8xbf16, #tpu.memory_space<vmem>>, vector<1x1x8x8xbf16>,
    %26 = vector.extract_strided_slice %12 {offsets = [0, 8], sizes = [8, 8], strides = [1, 1]} : vector<8x32xf32> to vector<8x8xf32>
    %27 = vector.extract_strided_slice %26 {offsets = [0, 4], sizes = [8, 4], strides = [1, 1]} : vector<8x8xf32> to vector<8x4xf32>
    %28 = vector.extract_strided_slice %26 {offsets = [0, 0], sizes = [8, 4], strides = [1, 1]} : vector<8x8xf32> to vector<8x4xf32>
    %29 = tpu.concatenate %27, %28 in 1 : vector<8x4xf32>, vector<8x4xf32> -> vector<8x8xf32>
    %c0_16 = arith.constant 0 : index
    %c0_17 = arith.constant 0 : index
    %30 = vector.load %arg5[%c0_16, %c0_17] : memref<8x8xf32, #tpu.memory_space<vmem>>, vector<8x8xf32>
    %31 = arith.mulf %26, %30 : vector<8x8xf32>
    %c0_18 = arith.constant 0 : index
    %c0_19 = arith.constant 0 : index
    %32 = vector.load %arg6[%c0_18, %c0_19] : memref<8x8xf32, #tpu.memory_space<vmem>>, vector<8x8xf32>
    %33 = arith.mulf %29, %32 : vector<8x8xf32>
    %34 = arith.addf %31, %33 : vector<8x8xf32>
    %35 = arith.truncf %34 : vector<8x8xf32> to vector<8x8xbf16>
    %c0_20 = arith.constant 0 : index
    %c1 = arith.constant 1 : index
    %c0_21 = arith.constant 0 : index
    %c0_22 = arith.constant 0 : index
    %36 = vector.load %arg7[%c0_20, %c1, %c0_21, %c0_22] : memref<1x4x8x8xbf16, #tpu.memory_space<vmem>>, vector<1x1x8x8xbf16>
    %37 = vector.shape_cast %36 : vector<1x1x8x8xbf16> to vector<8x8xbf16>
    %38 = vector.shape_cast %35 : vector<8x8xbf16> to vector<1x1x8x8xbf16>
    tpu.vector_store %arg7[%c0_20, %c1, %c0_21, %c0_22], %38 {strides = array<i32>} : memref<1x4x8x8xbf16, #tpu.memory_space<vmem>>, vector<1x1x8x8xbf16>,
    %39 = vector.extract_strided_slice %12 {offsets = [0, 16], sizes = [8, 8], strides = [1, 1]} : vector<8x32xf32> to vector<8x8xf32>
    %40 = vector.extract_strided_slice %39 {offsets = [0, 4], sizes = [8, 4], strides = [1, 1]} : vector<8x8xf32> to vector<8x4xf32>
    %41 = vector.extract_strided_slice %39 {offsets = [0, 0], sizes = [8, 4], strides = [1, 1]} : vector<8x8xf32> to vector<8x4xf32>
    %42 = tpu.concatenate %40, %41 in 1 : vector<8x4xf32>, vector<8x4xf32> -> vector<8x8xf32>
    %c0_23 = arith.constant 0 : index
    %c0_24 = arith.constant 0 : index
    %43 = vector.load %arg5[%c0_23, %c0_24] : memref<8x8xf32, #tpu.memory_space<vmem>>, vector<8x8xf32>
    %44 = arith.mulf %39, %43 : vector<8x8xf32>
    %c0_25 = arith.constant 0 : index
    %c0_26 = arith.constant 0 : index
    %45 = vector.load %arg6[%c0_25, %c0_26] : memref<8x8xf32, #tpu.memory_space<vmem>>, vector<8x8xf32>
    %46 = arith.mulf %42, %45 : vector<8x8xf32>
    %47 = arith.addf %44, %46 : vector<8x8xf32>
    %48 = arith.truncf %47 : vector<8x8xf32> to vector<8x8xbf16>
    %c0_27 = arith.constant 0 : index
    %c2 = arith.constant 2 : index
    %c0_28 = arith.constant 0 : index
    %c0_29 = arith.constant 0 : index
    %49 = vector.load %arg7[%c0_27, %c2, %c0_28, %c0_29] : memref<1x4x8x8xbf16, #tpu.memory_space<vmem>>, vector<1x1x8x8xbf16>
    %50 = vector.shape_cast %49 : vector<1x1x8x8xbf16> to vector<8x8xbf16>
    %51 = vector.shape_cast %48 : vector<8x8xbf16> to vector<1x1x8x8xbf16>
    tpu.vector_store %arg7[%c0_27, %c2, %c0_28, %c0_29], %51 {strides = array<i32>} : memref<1x4x8x8xbf16, #tpu.memory_space<vmem>>, vector<1x1x8x8xbf16>,
    %52 = vector.extract_strided_slice %12 {offsets = [0, 24], sizes = [8, 8], strides = [1, 1]} : vector<8x32xf32> to vector<8x8xf32>
    %53 = vector.extract_strided_slice %52 {offsets = [0, 4], sizes = [8, 4], strides = [1, 1]} : vector<8x8xf32> to vector<8x4xf32>
    %54 = vector.extract_strided_slice %52 {offsets = [0, 0], sizes = [8, 4], strides = [1, 1]} : vector<8x8xf32> to vector<8x4xf32>
    %55 = tpu.concatenate %53, %54 in 1 : vector<8x4xf32>, vector<8x4xf32> -> vector<8x8xf32>
    %c0_30 = arith.constant 0 : index
    %c0_31 = arith.constant 0 : index
    %56 = vector.load %arg5[%c0_30, %c0_31] : memref<8x8xf32, #tpu.memory_space<vmem>>, vector<8x8xf32>
    %57 = arith.mulf %52, %56 : vector<8x8xf32>
    %c0_32 = arith.constant 0 : index
    %c0_33 = arith.constant 0 : index
    %58 = vector.load %arg6[%c0_32, %c0_33] : memref<8x8xf32, #tpu.memory_space<vmem>>, vector<8x8xf32>
    %59 = arith.mulf %55, %58 : vector<8x8xf32>
    %60 = arith.addf %57, %59 : vector<8x8xf32>
    %61 = arith.truncf %60 : vector<8x8xf32> to vector<8x8xbf16>
    %c0_34 = arith.constant 0 : index
    %c3 = arith.constant 3 : index
    %c0_35 = arith.constant 0 : index
    %c0_36 = arith.constant 0 : index
    %62 = vector.load %arg7[%c0_34, %c3, %c0_35, %c0_36] : memref<1x4x8x8xbf16, #tpu.memory_space<vmem>>, vector<1x1x8x8xbf16>
    %63 = vector.shape_cast %62 : vector<1x1x8x8xbf16> to vector<8x8xbf16>
    %64 = vector.shape_cast %61 : vector<8x8xbf16> to vector<1x1x8x8xbf16>
    tpu.vector_store %arg7[%c0_34, %c3, %c0_35, %c0_36], %64 {strides = array<i32>} : memref<1x4x8x8xbf16, #tpu.memory_space<vmem>>, vector<1x1x8x8xbf16>,
    return
  }
  func.func @transform_0(%arg0: i32, %arg1: i32) -> (i32, i32, i32) {
    %c0_i32 = arith.constant 0 : i32
    %c0_i32_0 = arith.constant 0 : i32
    return %arg0, %arg1, %c0_i32 : i32, i32, i32
  }
  func.func @transform_1(%arg0: i32, %arg1: i32) -> (i32, i32) {
    %c0_i32 = arith.constant 0 : i32
    %c0_i32_0 = arith.constant 0 : i32
    %c0_i32_1 = arith.constant 0 : i32
    return %c0_i32, %c0_i32_0 : i32, i32
  }
  func.func @transform_2(%arg0: i32, %arg1: i32) -> (i32, i32) {
    %c0_i32 = arith.constant 0 : i32
    %c0_i32_0 = arith.constant 0 : i32
    %c0_i32_1 = arith.constant 0 : i32
    return %c0_i32, %c0_i32_0 : i32, i32
  }
  func.func @transform_3(%arg0: i32, %arg1: i32) -> (i32, i32) {
    %c0_i32 = arith.constant 0 : i32
    %c0_i32_0 = arith.constant 0 : i32
    return %arg1, %c0_i32 : i32, i32
  }
  func.func @transform_4(%arg0: i32, %arg1: i32) -> (i32, i32) {
    %c0_i32 = arith.constant 0 : i32
    %c0_i32_0 = arith.constant 0 : i32
    return %arg1, %c0_i32 : i32, i32
  }
  func.func @transform_5(%arg0: i32, %arg1: i32) -> (i32, i32, i32, i32) {
    %c0_i32 = arith.constant 0 : i32
    %c0_i32_0 = arith.constant 0 : i32
    %c0_i32_1 = arith.constant 0 : i32
    return %arg0, %c0_i32, %arg1, %c0_i32_0 : i32, i32, i32, i32
  }
}

</mosaic_0001>

<bundles_post_ra>
// kernel: tpu_custom_call.1
= control target key start
LH: loop header
LB: loop body
LE: loop exit
PB: predicated region body
PF: predicated region fallthrough
CT: control target
= control target key end

     0   :  { %s1224_s0 = inlined_call_operand.hbm [shape: f32[2,8,32], index: 0, kind: input, shape index: {}]   ;;  %s1225_s1 = inlined_call_operand.hbm [shape: bf16[32,32], index: 1, kind: input, shape index: {}]   ;;  %s1226_s2 = inlined_call_operand.vmem [shape: f32[1,32], index: 2, kind: input, shape index: {}]   ;;  %s1227_s3 = inlined_call_operand.hbm [shape: f32[8,8], index: 3, kind: input, shape index: {}]   ;;  %s1228_s4 = inlined_call_operand.hbm [shape: f32[8,8], index: 4, kind: input, shape index: {}]   ;;  %s1229_s5 = inlined_call_operand.hbm [shape: bf16[2,4,8,8], index: 5, kind: output, shape index: {}]  }
   0x1   :  { %1234 = sst [smem:[#allocation15_spill]] %s1225_s1 }
   0x2   :  { %10 = vsyncpa [#allocation3], 0 }
   0x3   :  { %12 = vsyncpa [#allocation3 + $0x1], 0 }
   0x4   :  { %13 = vsyncpa [#allocation6], 0 }
   0x5   :  { %14 = vsyncpa [#allocation9], 0 }
   0x6   :  { %15 = vsyncpa [#allocation4], 0 }
   0x7   :  { %17 = vsyncpa [#allocation4 + $0x1], 0  ;;  %s1014_s18 = smov 0   ;;  %s1016_s19 = smov 0  }
   0x8   :  { %s1018_s20 = smov 0   ;;  %s1020_s21 = smov 0  }
   0x9   :  { %s1022_s22 = smov 0   ;;  %s1024_s23 = smov 0  }
   0xa LB: > { %s611_s24 = sadd.s32 4294967295, %s961_s23   ;;  %s612_s25 = sadd.s32 4294967294, %s961_s23   ;;  %s961_s23 = sphi %s1024_s23, %s23_s23   ;;  %s957_s22 = sphi %s1022_s22, %s1253_s22   ;;  %s953_s21 = sphi %s1020_s21, %s1252_s21   ;;  %s949_s20 = sphi %s1018_s20, %s1251_s20   ;;  %s945_s19 = sphi %s1016_s19, %s1250_s19   ;;  %s941_s18 = sphi %s1014_s18, %s1249_s18  }
   0xb   : > { %p57_p0 = scmp.ne.s32.totalorder %s945_s19, %s941_s18  ;;  %p1048_p1 = scmp.eq.s32.totalorder %s611_s24, 0 }
   0xc   : > { %p1052_p2 = scmp.eq.s32.totalorder %s611_s24, 1  ;;  %p183_p3 = scmp.eq.s32.totalorder %s612_s25, 1 }
   0xd   : > { %s1235_s26 = scalar_select %p1048_p1, 1, 0 }
   0xe   : > { %p1058_p4 = por %p1048_p1, %p57_p0  ;;  %p613_p5 = scmp.ge.s32.totalorder %s961_s23, 1 }
   0xf   : > { %p1063_p6 = por %p183_p3, %p57_p0  ;;  %p190_p7 = scmp.lt.s32.totalorder %s961_s23, 3 }
  0x10   : > { %s1237_s28 = scalar_select %p1058_p4, 1, 0 }
  0x11   : > { %s1238_s29 = scalar_select %p1063_p6, 1, 0 }
  0x12   : > { %p1068_p8 = pnand %p613_p5, %p190_p7  ;;  %s963_s6 = smov [#allocation5]  }
  0x13   : > { %s202_s7 = sshll.u32 %s963_s6, 4  ;;  %s964_s9 = smov [#allocation7]   ;;  %s203_s7 = int_to_ptr.vmem [resolvable:$true] %s202_s7 }
  0x14   : > { %s1239_s30 = scalar_select %p1068_p8, 1, 0 }
  0x15   : > { %p672_p9 = pneg %p1068_p8  ;;  %s221_s10 = sshll.u32 %s964_s9, 4  ;;  %s222_s10 = int_to_ptr.vmem [resolvable:$true] %s221_s10 }
  0x16   : > { %s965_s11 = smov [#allocation8]   ;;  %s778_s13 = scalar_lea.vmem %s203_s7, 256 }
  0x17   : > { %p1077_p11 = pnand %p672_p9, %p1048_p1  ;;  %s234_s12 = sshll.u32 %s965_s11, 4  ;;  %s235_s12 = int_to_ptr.vmem [resolvable:$true] %s234_s12 }
  0x18   : > { %p779_p13 = scmp.ne.s32.totalorder %s203_s7, %s778_s13  ;;  %p786_p5 = scmp.lt.s32.totalorder %s203_s7, %s203_s7 }
  0x19   : > { %p769_p12 = pneg %p1077_p11  ;;  %p787_p7 = scmp.lt.s32.totalorder %s778_s13, %s778_s13 }
  0x1b   : > { %p781_p0 = pnand %p779_p13, %p769_p12  ;;  %p788_p9 = por %p787_p7, %p786_p5 }
  0x1d   : > { %p782_p3 = pneg %p781_p0 }
  0x1f   : > { %p789_p10 = pnand %p788_p9, %p782_p3 }
  0x21   : > { %792 = shalt.err (!%p789_p10)
}
  0x22   : > { %s966_s14 = smov 64   ;;  %s967_s15 = smov 4  }
  0x23   : > { %s1241_s1 = sld [smem:[#allocation15_spill]]  ;;  %s804_s24 = scalar_lea.vmem %s222_s10, 128 }
  0x24   : > { %p805_p6 = scmp.ne.s32.totalorder %s222_s10, %s804_s24  ;;  %p812_p1 = scmp.lt.s32.totalorder %s222_s10, %s222_s10 }
  0x25   : > { %p813_p4 = scmp.lt.s32.totalorder %s804_s24, %s804_s24 }
  0x26   : > { %p807_p13 = pnand %p805_p6, %p769_p12 }
  0x27   : > { %p814_p5 = por %p813_p4, %p812_p1 }
  0x28   : > { %p808_p0 = pneg %p807_p13 }
  0x29   : > { %675 = dma.hbm_to_vmem [thread:$0]  (!%p1077_p11), %s1241_s1, 256, %s203_s7, [#allocation6], %s966_s14, %s966_s14, %s967_s15  }
  0x2a   : > { %p815_p3 = pnand %p814_p5, %p808_p0 }
  0x2c   : > { %818 = shalt.err (!%p815_p3)
}
  0x2d   : > { %678 = dma.hbm_to_vmem [thread:$0]  (!%p1077_p11), %s1227_s3, 128, %s222_s10, [#allocation6]  }
  0x2e   : > { %s830_s7 = scalar_lea.vmem %s235_s12, 128  ;;  %p838_p9 = scmp.lt.s32.totalorder %s235_s12, %s235_s12 }
  0x2f   : > { %p831_p10 = scmp.ne.s32.totalorder %s235_s12, %s830_s7  ;;  %p839_p13 = scmp.lt.s32.totalorder %s830_s7, %s830_s7 }
  0x31   : > { %p833_p7 = pnand %p831_p10, %p769_p12  ;;  %p840_p8 = por %p839_p13, %p838_p9 }
  0x33   : > { %p834_p6 = pneg %p833_p7 }
  0x35   : > { %p841_p1 = pnand %p840_p8, %p834_p6 }
  0x37   : > { %844 = shalt.err (!%p841_p1)
}
  0x38   : > { %681 = dma.hbm_to_vmem [thread:$0]  (!%p1077_p11), %s1228_s4, 128, %s235_s12, [#allocation9]  }
  0x39   : > { %s44_s10 = sadd.s32 1, %s949_s20  ;;  %s35_s13 = sadd.s32 1, %s957_s22 }
  0x3a   : > { %p51_p4 = scmp.ne.s32.totalorder %s949_s20, %s945_s19  ;;  %p37_p8 = scmp.ge.s32.totalorder %s35_s13, 2 }
  0x3b   : > { %p52_p12 = scmp.eq.s32.totalorder %s961_s23, 0  ;;  %p693_p5 = scmp.lt.s32.totalorder %s961_s23, 2 }
  0x3c   : > { %p1114_p0 = por %p1052_p2, %p51_p4  ;;  %s1255_s13 = smov (%p37_p8, %s35_s13), 0 }
  0x3d   : > { %p53_p3 = por %p52_p12, %p51_p4  ;;  %s245_s14 = sand.u32 1, %s949_s20  }
  0x3e   : > { %s39_s15 = ssub.s32 %s957_s22, %s1255_s13  ;;  %s618_s12 = sshll.u32 %s245_s14, 3 }
  0x3f   : > { %p42_p10 = scmp.eq.s32.totalorder %s39_s15, 0  ;;  %s619_s16 = sshll.u32 %s957_s22, 7 }
  0x40   : > { %s255_s27 = scalar_lea.hbm %s1224_s0, %s619_s16  ;;  %s249_s6 = scalar_lea.vmem [#allocation2], %s618_s12 }
  0x41   : > { %s1126_s17 = scalar_select %p42_p10, %s949_s20, %s44_s10  }
  0x42   : > { %s257_s7 = sshll.u32 %s249_s6, 4  ;;  %p1133_p2 = pnand %p693_p5, %p53_p3  ;;  %s258_s7 = int_to_ptr.vmem [resolvable:$true] %s257_s7 }
  0x43   : > { %s246_s11 = scalar_lea.sflag [#allocation3], %s245_s14  ;;  %s858_s15 = scalar_lea.vmem %s258_s7, 128 }
  0x44   : > { %p847_p11 = pneg %p1133_p2  ;;  %p859_p7 = scmp.ne.s32.totalorder %s258_s7, %s858_s15 }
  0x45   : > { %s968_s10 = smov [#allocation2]  }
  0x46   : > { %p861_p6 = pnand %p859_p7, %p847_p11  ;;  %s863_s1 = sshll.u32 %s968_s10, 4  ;;  %s864_s1 = int_to_ptr.vmem [resolvable:$false] %s863_s1 }
  0x47   : > { %s865_s16 = scalar_lea.vmem %s864_s1, 256  ;;  %p866_p13 = scmp.lt.s32.totalorder %s258_s7, %s864_s1 }
  0x48   : > { %p862_p9 = pneg %p861_p6  ;;  %p867_p1 = scmp.lt.s32.totalorder %s865_s16, %s858_s15 }
  0x4a   : > { %p868_p4 = por %p867_p1, %p866_p13 }
  0x4c   : > { %p869_p8 = pnand %p868_p4, %p862_p9 }
  0x4e   : > { %872 = shalt.err (!%p869_p8)
}
  0x4f   : > { %685 = dma.hbm_to_vmem [thread:$0]  (!%p1133_p2), %s255_s27, 128, %s258_s7, %s246_s11  }
  0x50   : > { %p1244_p12 = scmp.ne.s32.totalorder %s1239_s30, 0 }
  0x51   : > { %s1144_s14 = sand.u32 (!%p1244_p12), 1, %s945_s19   ;;  %p1245_p5 = scmp.ne.s32.totalorder (!%p1244_p12), %s1237_s28, 0 }
  0x52   : > { %266 = sbr.rel (%p1244_p12) target bundleno = 674 (0x2a2), region = 40  ;;  %s621_s12 = sshll.u32 (!%p1244_p12), %s1144_s14, 3 }
  0x53   : > { %s269_s24 = scalar_lea.sflag (!%p1244_p12), [#allocation3], %s1144_s14  ;;  %s272_s25 = scalar_lea.vmem (!%p1244_p12), [#allocation2], %s621_s12 }
  0x57   : > { %924 = dma.done.wait (%p1245_p5), %s269_s24, 128  }
  0x58   : > { %926 = vsyncadd (%p1245_p5), %s269_s24, 4294967168  ;;  %p1246_p3 = scmp.ne.s32.totalorder %s1235_s26, 0 }
  0x5a   : > { %928 = dma.done.wait (%p1246_p3), [#allocation6], 384  }
  0x5b   : > { %930 = vsyncadd (%p1246_p3), [#allocation6], 4294966912 }
  0x5c   : > { %932 = dma.done.wait (%p1246_p3), [#allocation9], 128  }
  0x5d   : > { %934 = vsyncadd (%p1246_p3), [#allocation9], 4294967168  ;;  %v969_v0 = vmov 0.0   ;;  %vm970_vm0 = vmmov 0   ;;  %v765_v1 = vld [vmem:[#allocation5 + $0x8] sm:$0xff]   ;;  %v766_v2 = vld [vmem:[#allocation5] sm:$0xff]  }
  0x5e   : > { %648 = vmatprep.subr.bf16.mxu0 %v969_v0  ;;  %652 = vmatprep.mubr.msk.bf16.mxu0 %vm970_vm0, %v969_v0  ;;  %v312_v3 = vld [vmem:[%s272_s25] sm:$0xff]  ;;  %vm337_vm1 = vcmask 261120   ;;  %s971_s26 = smov 108   ;;  %s972_s30 = smov 124   ;;  %vm391_vm3 = vcmask 31744   ;;  %vm399_vm4 = vcmask 60416  }
  0x5f   : > { %649 = vmatpush3.bf16.msra.mxu0 %v765_v1  ;;  %v313_v4 = vpack.c.bf16 %v312_v3, %v312_v3  ;;  %v626_v5 = vld [vmem:[%s1226_s2] ss:$0 sm:$0xff]  ;;  %s973_s27 = smov 100   ;;  %s974_s6 = smov 116   ;;  %v463_v16 = vld [vmem:[#allocation8] sm:$0xff] }
  0x60   : > { %650 = vmatprep.subr.bf16.mxu0 %v969_v0  ;;  %v431_v13 = vld [vmem:[#allocation7] sm:$0xff]  ;;  %s975_s7 = smov 16   ;;  %s976_s9 = smov 8  }
  0x61   : > { %s977_s11 = smov 24   ;;  %s978_s15 = smov 4  }
  0x62   : > { %s979_s10 = smov 120   ;;  %s980_s16 = smov 112  }
  0x63   : > { %651 = vmatpush3.bf16.msra.mxu0 %v766_v2  ;;  %s625_s12 = sshll.u32 %s1144_s14, 4  ;;  %s981_s24 = smov 104  }
  0x64   : > { %s310_s25 = scalar_lea.vmem [#allocation10], %s625_s12  ;;  %s644_s28 = sshll.u32 %s953_s21, 8 }
  0x65   : > { %s494_s1 = sshll.u32 %s310_s25, 4  ;;  %s982_s21 = smov [#allocation10]   ;;  %s1170_s1 = int_to_ptr.vmem [resolvable:$true] %s494_s1 }
  0x66   : > { %653 = vmatmul.mubr.msk.bf16.vlgmr.msra.gmra.mxu0 %vm337_vm1, %v313_v4 }
 0x126   : > { %v375_v6 = vpop.f32.mrf.mxu0 }
 0x127   : > { %v376_v7 = vadd.f32 %v626_v5, %v375_v6 }
 0x128   : > { %v654_v8 = vpop.f32.mrf.mxu0 }
 0x129   : > { %vm381_vm2 = vcmp.ge.f32.partialorder %v376_v7, 0.0  ;;  %v382_v9 = vmul.f32 0.2, %v376_v7 }
 0x12a   : > { %v378_v10 = vpop.f32.mrf.mxu0 }
 0x12b   : > { %v383_v11 = vsel %vm381_vm2, %v376_v7, %v382_v9 }
 0x12c   : > { %427 = vrot.lane.b32.xlu1 %v383_v11, %s971_s26  ;;  %385 = vrot.lane.b32.xlu0 %v383_v11, %s972_s30  ;;  %v655_v12 = vpop.f32.mrf.mxu0  ;;  %v394_v41 = vmul.f32 %v431_v13, %v383_v11 }
 0x130   : > { %453 = vrot.lane.b32.xlu1 %v383_v11, %s973_s27  ;;  %401 = vrot.lane.b32.xlu0 %v383_v11, %s974_s6  ;;  %s1175_s27 = scalar_lea.hbm %s1229_s5, %s644_s28  ;;  %s480_s6 = scalar_lea.sflag [#allocation4], %s1144_s14 }
 0x134   : > { %433 = vrot.lane.b32.xlu1 %v431_v13, %s975_s7  ;;  %407 = vrot.lane.b32.xlu0 %v431_v13, %s976_s9 }
 0x138   : > { %459 = vrot.lane.b32.xlu0 %v431_v13, %s977_s11 }
 0x19e   : > { %v428_v14 = vpop.permute.xlu1 %427  ;;  %v386_v15 = vpop.permute.xlu0 %385 }
 0x1a2   : > { %v454_v17 = vpop.permute.xlu1 %453  ;;  %v402_v18 = vpop.permute.xlu0 %401 }
 0x1a3   : > { %v404_v19 = vsel %vm391_vm3, %v402_v18, %v386_v15  ;;  %v430_v20 = vsel %vm391_vm3, %v428_v14, %v402_v18  ;;  %v456_v23 = vsel %vm391_vm3, %v454_v17, %v428_v14 }
 0x1a4   : > { %v412_v21 = vmul.f32 %v463_v16, %v404_v19  ;;  %v438_v22 = vmul.f32 %v463_v16, %v430_v20  ;;  %v464_v24 = vmul.f32 %v463_v16, %v456_v23 }
 0x1a6   : > { %440 = vrot.lane.b32.xlu0 %v438_v22, %s975_s7  ;;  %414 = vrot.lane.b32.xlu1 %v412_v21, %s976_s9  ;;  %v408_v25 = vpop.permute.xlu0 %407  ;;  %v434_v26 = vpop.permute.xlu1 %433  ;;  %s873_s7 = scalar_lea.vmem %s1170_s1, 256  ;;  %s877_s9 = sshll.u32 %s982_s21, 4  ;;  %s878_s9 = int_to_ptr.vmem [resolvable:$false] %s877_s9 }
 0x1a7   : > { %v436_v28 = vmul.f32 %v434_v26, %v383_v11  ;;  %v410_v29 = vmul.f32 %v408_v25, %v383_v11  ;;  %p874_p10 = scmp.ne.s32.totalorder %s1170_s1, %s873_s7  ;;  %p880_p7 = scmp.lt.s32.totalorder %s1170_s1, %s878_s9 }
 0x1a9   : > { %p875_p2 = pnand %p874_p10, %p1114_p0 }
 0x1aa   : > { %388 = vrot.lane.b32.xlu0 %v383_v11, %s978_s15  ;;  %466 = vrot.lane.b32.xlu1 %v464_v24, %s977_s11  ;;  %v460_v27 = vpop.permute.xlu0 %459  ;;  %s879_s11 = scalar_lea.vmem %s878_s9, 512 }
 0x1ab   : > { %v462_v34 = vmul.f32 %v460_v27, %v383_v11  ;;  %p876_p11 = pneg %p875_p2  ;;  %p881_p6 = scmp.lt.s32.totalorder %s879_s11, %s873_s7 }
 0x1ad   : > { %p882_p9 = por %p881_p6, %p880_p7 }
 0x1af   : > { %p883_p13 = pnand %p882_p9, %p876_p11 }
 0x218   : > { %v415_v30 = vpop.permute.xlu1 %414  ;;  %v441_v31 = vpop.permute.xlu0 %440 }
 0x219   : > { %v417_v32 = vadd.f32 %v415_v30, %v410_v29  ;;  %v443_v33 = vadd.f32 %v441_v31, %v436_v28 }
 0x21b   : > { %v641_v35 = vpack.c.bf16 %v417_v32, %v417_v32  ;;  %v642_v36 = vpack.c.bf16 %v443_v33, %v443_v33 }
 0x21c   : > { %v467_v37 = vpop.permute.xlu1 %466  ;;  %v389_v38 = vpop.permute.xlu0 %388 }
 0x21d   : > { %v469_v39 = vadd.f32 %v467_v37, %v462_v34  ;;  %v392_v40 = vsel %vm391_vm3, %v386_v15, %v389_v38  ;;  %422 = vrot.lane.b32.xlu1 %v641_v35, %s979_s10  ;;  %448 = vrot.lane.b32.xlu0 %v642_v36, %s980_s16 }
 0x21e   : > { %v396_v42 = vmul.f32 %v463_v16, %v392_v40 }
 0x21f   : > { %v643_v43 = vpack.c.bf16 %v469_v39, %v469_v39 }
 0x220   : > { %v397_v44 = vadd.f32 %v396_v42, %v394_v41 }
 0x221   : > { %474 = vrot.lane.b32.xlu1 %v643_v43, %s981_s24 }
 0x222   : > { %v398_v45 = vpack.c.bf16 %v397_v44, %v397_v44 }
 0x224   : > { %400 = vst.msk [vmem:[%s310_s25] sm:$0xf] %vm399_vm4, %v398_v45 }
 0x28f   : > { %v423_v46 = vpop.permute.xlu1 %422  ;;  %v449_v47 = vpop.permute.xlu0 %448 }
 0x290   : > { %631 = vst.msk [vmem:[%s310_s25 + $0x4] sm:$0xf] %vm399_vm4, %v423_v46  ;;  %633 = vst.msk [vmem:[%s310_s25 + $0x8] sm:$0xf] %vm399_vm4, %v449_v47 }
 0x293   : > { %v475_v48 = vpop.permute.xlu1 %474 }
 0x294   : > { %635 = vst.msk [vmem:[%s310_s25 + $0xc] sm:$0xf] %vm399_vm4, %v475_v48 }
 0x295   : > { %886 = shalt.err (!%p883_p13)
}
 0x296   : > { %s887_s10 = scalar_lea.hbm %s1175_s27, 256  ;;  %s891_s24 = scalar_lea.hbm %s1229_s5, 512 }
 0x297   : > { %p888_p1 = scmp.ne.s32.totalorder %s1175_s27, %s887_s10  ;;  %p892_p12 = scmp.lt.s32.totalorder %s1175_s27, %s1229_s5 }
 0x298   : > { %p893_p5 = scmp.lt.s32.totalorder %s891_s24, %s887_s10 }
 0x299   : > { %p889_p4 = pnand %p888_p1, %p1114_p0 }
 0x29a   : > { %p894_p3 = por %p893_p5, %p892_p12 }
 0x29b   : > { %p890_p8 = pneg %p889_p4 }
 0x29d   : > { %p895_p10 = pnand %p894_p3, %p890_p8 }
 0x29f   : > { %898 = shalt.err (!%p895_p10)
}
 0x2a0   : > { %s983_s26 = smov 64  }
 0x2a1   : > { %670 = dma.vmem_to_hbm [thread:$0]  (%p1114_p0), %s1170_s1, 256, %s1175_s27, %s480_s6, %s983_s26, %s983_s26, %s978_s15  }
 0x2a2 PF: > { %s509_s30 = sand.u32 1, %s941_s18   ;;  %p1247_p2 = scmp.ne.s32.totalorder %s1238_s29, 0 }
 0x2a3   : > { %p1248_p11 = scmp.ge.s32.totalorder %s961_s23, 2  ;;  %s510_s7 = scalar_lea.sflag [#allocation4], %s509_s30 }
 0x2a5   : > { %p687_p7 = pnand %p1248_p11, %p1247_p2 }
 0x2a7   : > { %p688_p6 = pneg %p687_p7 }
 0x2a9   : > { %936 = dma.done.wait (%p688_p6), %s510_s7, 256  }
 0x2aa   : > { %938 = vsyncadd (%p688_p6), %s510_s7, 4294967040  ;;  %s23_s23 = sadd.s32 1, %s961_s23   ;;  %s1249_s18 = smov %s945_s19 }
 0x2ab   : > { %p20_p9 = scmp.ge.s32.totalorder %s23_s23, 4   ;;  %s1250_s19 = smov %s949_s20 }
 0x2ac   : > { %s1251_s20 = smov %s1126_s17  ;;  %s1252_s21 = smov %s957_s22 }
 0x2ad   : > { %s1253_s22 = smov %s1255_s13  ;;  %22 = sbr.rel (!%p20_p9) target bundleno = 10 (0xa), region = 102 }
 0x2b2   :  { %515 = vsyncpa [#allocation3], 1 }
 0x2b3   :  { %517 = vsyncpa [#allocation3 + $0x1], 1 }
 0x2b4   :  { %518 = vsyncpa [#allocation6], 1 }
 0x2b5   :  { %519 = vsyncpa [#allocation9], 1 }
 0x2b6   :  { %520 = vsyncpa [#allocation4], 1 }
 0x2b7   :  { %522 = vsyncpa [#allocation4 + $0x1], 1 }

</bundles_post_ra>
